<compile_context>
chip_gen: v6e
topology: v6e:2x2x1
jax: 0.10.0
libtpu: 0.0.40
codegen_flags: <defaults>
</compile_context>

<pallas_src>
import numpy as np
import jax
import jax.numpy as jnp
from jax.experimental import pallas as pl
from jax.experimental.pallas import tpu as pltpu

_HALF_PI = float(0.5 * np.pi)


def _frequency_values(n_harmonic_functions: int, omega_0: float, logspace: bool) -> np.ndarray:
    """Same frequencies as the torch module's `_frequencies` buffer."""
    if logspace:
        f = 2.0 ** np.arange(n_harmonic_functions, dtype=np.float32)
    else:
        f = np.linspace(1.0, 2.0 ** (n_harmonic_functions - 1),
                        n_harmonic_functions, dtype=np.float32)
    return (f * np.float32(omega_0)).astype(np.float32)


def harmonic_embedding_pallas(x,
                              diag_cov=None,
                              *,
                              n_harmonic_functions: int = 6,
                              omega_0: float = 1.0,
                              logspace: bool = True,
                              append_input: bool = True,
                              tile_m: int = 32768,
                              out_dtype=jnp.float32):
    """Pallas TPU version of HarmonicEmbedding.forward.

    Output layout matches the torch module:
      [..., sin(f_n * x_d) (d-major), cos(f_n * x_d) (d-major), x_d (if append_input)]
    Set out_dtype=jnp.bfloat16 to halve the HBM write stream (note: the
    appended raw input is then also stored as bf16).
    """
    orig_shape = x.shape
    D = int(orig_shape[-1])
    M = int(np.prod(orig_shape[:-1])) if len(orig_shape) > 1 else 1
    N = int(n_harmonic_functions)
    DN = D * N
    rows = 2 * DN + (D if append_input else 0)      # logical output dim
    out_dim = rows
    R_pad = ((rows + 7) // 8) * 8                   # sublane-aligned compute-block rows
    has_cov = diag_cov is not None

    # Per-row constants: row r (r in [0, DN)) carries f_{r % N} and f_{r % N}^2.
    # Passed as a small (DN, 2) operand so the kernel captures no array consts.
    freqs = _frequency_values(N, omega_0, logspace)                 # (N,)
    f_rows = np.tile(freqs, D)                                      # (DN,)
    consts = jnp.asarray(np.stack([f_rows, f_rows * f_rows], axis=1).astype(np.float32))

    # Feature-major input layout (points on lanes -> lane-dense VPU/EUP work).
    # This D-row wrapper transpose is a small extra pass (D*M*4 bytes); an
    # in-kernel (tile, 3) transpose would be a minor-dim-3 Mosaic shape.
    x2 = x.reshape(M, D).astype(jnp.float32)
    xT = x2.T                                                       # (D, M)
    covT = diag_cov.reshape(M, D).astype(jnp.float32).T if has_cov else None

    # Lane-tile selection: large tiles amortize the ~0.35us per-step overhead;
    # keep >=4 grid steps for moderate M so v7x's two cores share the work.
    tile_m = max(128, (int(tile_m) // 128) * 128)
    if M <= 256:
        tile = M
    else:
        quarter = max(128, (((M + 3) // 4) // 128) * 128)
        tile = min(tile_m, quarter)
    grid = (pl.cdiv(M, tile),)

    def _repeat_rows(a, reps):
        # (R, T) -> (R*reps, T), row r -> a[r // reps]; lowers to broadcast+reshape.
        R, T = a.shape
        return jnp.broadcast_to(a[:, None, :], (R, reps, T)).reshape(R * reps, T)

    def kernel(consts_ref, x_ref, *rest):
        if has_cov:
            cov_ref, o_ref = rest
        else:
            (o_ref,) = rest

        f_col = consts_ref[:, 0:1]                    # (DN, 1), f_{r % N}
        xT_blk = x_ref[...]                           # (D, tile)
        x_rep = _repeat_rows(xT_blk, N)               # (DN, tile), row r -> x_{r // N}
        fx = f_col * x_rep                            # (DN, tile)

        # One batched sin over [sin rows ; cos rows] (cos = sin(. + pi/2), as
        # in the torch module).  36 rows -> ~90% sublane utilization.
        phase = jnp.concatenate([fx, fx + _HALF_PI], axis=0)   # (2*DN, tile)
        emb = jnp.sin(phase)                                     # (2*DN, tile)

        if has_cov:
            f2_col = consts_ref[:, 1:2]                          # (DN, 1), f^2
            c_rep = _repeat_rows(cov_ref[...], N)                # (DN, tile)
            att = jnp.exp(-0.5 * (f2_col * c_rep))               # (DN, tile)
            emb = emb * jnp.concatenate([att, att], axis=0)

        parts = [emb]
        if append_input:
            parts.append(xT_blk)
        if R_pad > rows:
            parts.append(jnp.zeros((R_pad - rows, tile), jnp.float32))
        blk = jnp.concatenate(parts, axis=0)                     # (R_pad, tile), 8-aligned rows

        # Single in-kernel XLU transpose per tile -> output leaves the kernel
        # already in the reference (points, out_dim) layout; no wrapper-side
        # transpose pass over the full result.
        out_t = blk.T[:, :out_dim]                               # (tile, out_dim)
        o_ref[...] = out_t.astype(o_ref.dtype)

    in_specs = [
        pl.BlockSpec((DN, 2), lambda i: (0, 0)),       # tiny constant table
        pl.BlockSpec((D, tile), lambda i: (0, i)),     # feature-major x block
    ]
    operands = [consts, xT]
    if has_cov:
        in_specs.append(pl.BlockSpec((D, tile), lambda i: (0, i)))
        operands.append(covT)

    out_spec = pl.BlockSpec((tile, out_dim), lambda i: (i, 0))

    itemsize = jnp.dtype(out_dtype).itemsize
    cost = pl.CostEstimate(
        flops=int(M * 6 * DN),
        transcendentals=int(M * (2 * DN + (DN if has_cov else 0))),
        bytes_accessed=int(M * (D * 4 * (1 + int(has_cov)) + out_dim * itemsize)),
    )

    out2 = pl.pallas_call(
        kernel,
        out_shape=jax.ShapeDtypeStruct((M, out_dim), out_dtype),
        grid_spec=pltpu.PrefetchScalarGridSpec(
            num_scalar_prefetch=0,
            grid=grid,
            in_specs=in_specs,
            out_specs=out_spec,
        ),
        compiler_params=pltpu.CompilerParams(
            dimension_semantics=("parallel",),
            # tile_m=32768 f32 needs ~25-30 MiB (double-buffered output block +
            # in-kernel temporaries); raise the scoped-VMEM cap explicitly so it
            # fits on v5e (16 MiB default) and v6e/v7x (32 MiB default).
            vmem_limit_bytes=48 * 1024 * 1024,
        ),
        cost_estimate=cost,
    )(*operands)

    # Pure layout plumbing (no transpose): (M, out_dim) -> [..., out_dim].
    return out2.reshape(*orig_shape[:-1], out_dim)


def harmonic_embedding_ref(x, diag_cov=None, *, n_harmonic_functions=6, omega_0=1.0,
                           logspace=True, append_input=True):
    """Pure-JAX transcription of the PyTorch forward (reference)."""
    freqs = jnp.asarray(_frequency_values(n_harmonic_functions, omega_0, logspace))
    zero_half_pi = jnp.array([0.0, 0.5 * np.pi], dtype=jnp.float32)
    embed = x[..., None] * freqs                                      # [..., D, N]
    embed = embed[..., None, :, :] + zero_half_pi[..., None, None]    # [..., 2, D, N]
    embed = jnp.sin(embed)
    if diag_cov is not None:
        x_var = diag_cov[..., None] * freqs ** 2
        exp_var = jnp.exp(-0.5 * x_var)
        embed = embed * exp_var[..., None, :, :]
    embed = embed.reshape(*x.shape[:-1], -1)
    if append_input:
        return jnp.concatenate([embed, x], axis=-1)
    return embed


if __name__ == "__main__":
    key = jax.random.PRNGKey(0)
    k1, k2, k3 = jax.random.split(key, 3)

    # x: [batch=2, points_per_ray=64, dim=3] -> output [2, 64, 3*(2*6+1)=39]
    x = jax.random.normal(k1, (2, 64, 3), dtype=jnp.float32)

    # Plain NeRF positional-encoding path (diag_cov=None).
    out = jax.block_until_ready(harmonic_embedding_pallas(x))
    ref = harmonic_embedding_ref(x)
    assert out.shape == ref.shape, (out.shape, ref.shape)
    np.testing.assert_allclose(np.asarray(out), np.asarray(ref), atol=1e-5, rtol=1e-5)

    # MIP-NeRF integrated-encoding path (diag_cov provided).
    diag_cov = jax.random.uniform(k2, (2, 64, 3), dtype=jnp.float32)
    out_c = jax.block_until_ready(harmonic_embedding_pallas(x, diag_cov))
    ref_c = harmonic_embedding_ref(x, diag_cov)
    assert out_c.shape == ref_c.shape, (out_c.shape, ref_c.shape)
    np.testing.assert_allclose(np.asarray(out_c), np.asarray(ref_c), atol=1e-5, rtol=1e-5)

    # Multi-step grid with a partial last tile (exercises output masking),
    # plus the append_input=False / linspace branches on a tiny input.
    x3 = jax.random.normal(k3, (300, 3), dtype=jnp.float32)
    out3 = jax.block_until_ready(harmonic_embedding_pallas(x3))
    ref3 = harmonic_embedding_ref(x3)
    np.testing.assert_allclose(np.asarray(out3), np.asarray(ref3), atol=1e-5, rtol=1e-5)

    x4 = jax.random.normal(k1, (2, 8, 3), dtype=jnp.float32)
    out4 = jax.block_until_ready(
        harmonic_embedding_pallas(x4, logspace=False, append_input=False))
    ref4 = harmonic_embedding_ref(x4, logspace=False, append_input=False)
    np.testing.assert_allclose(np.asarray(out4), np.asarray(ref4), atol=1e-5, rtol=1e-5)

    print("KERNEL_OK")
</pallas_src>

<mosaic_0001>
module attributes {stable_mosaic.version = 11 : i64} {
  func.func @kernel(%arg0: i32, %arg1: memref<18x2xf32, #tpu.memory_space<vmem>>, %arg2: memref<3x128xf32, #tpu.memory_space<vmem>>, %arg3: memref<128x39xf32, #tpu.memory_space<vmem>>) attributes {dimension_semantics = [#tpu.dimension_semantics<parallel>], iteration_bounds = array<i64: 1>, scalar_prefetch = 0 : i64, scratch_operands = 0 : i64, tpu.core_type = #tpu.core_type<tc>, window_params = [{pipeline_mode = #tpu.pipeline_mode<synchronous>, transform_indices = @transform_0, window_bounds = array<i64: 18, 2>}, {transform_indices = @transform_1, window_bounds = array<i64: 3, 128>}, {transform_indices = @transform_2, window_bounds = array<i64: 128, 39>}]} {
    %c0 = arith.constant 0 : index
    %c0_0 = arith.constant 0 : index
    %0 = vector.load %arg1[%c0, %c0_0] : memref<18x2xf32, #tpu.memory_space<vmem>>, vector<18x1xf32>
    %c0_1 = arith.constant 0 : index
    %c0_2 = arith.constant 0 : index
    %1 = vector.load %arg2[%c0_1, %c0_2] : memref<3x128xf32, #tpu.memory_space<vmem>>, vector<3x128xf32>
    %2 = vector.shape_cast %1 : vector<3x128xf32> to vector<3x1x128xf32>
    %3 = vector.shape_cast %2 : vector<3x1x128xf32> to vector<3x1x128xf32>
    %4 = vector.broadcast %3 : vector<3x1x128xf32> to vector<3x6x128xf32>
    %5 = vector.shape_cast %4 : vector<3x6x128xf32> to vector<18x128xf32>
    %6 = vector.broadcast %0 : vector<18x1xf32> to vector<18x128xf32>
    %7 = arith.mulf %6, %5 : vector<18x128xf32>
    %cst = arith.constant 1.57079637 : f32
    %8 = vector.broadcast %cst : f32 to vector<18x128xf32>
    %9 = arith.addf %7, %8 : vector<18x128xf32>
    %10 = tpu.concatenate %7, %9 in 0 : vector<18x128xf32>, vector<18x128xf32> -> vector<36x128xf32>
    %11 = math.sin %10 : vector<36x128xf32>
    %cst_3 = arith.constant 0.000000e+00 : f32
    %12 = vector.broadcast %cst_3 : f32 to vector<1x128xf32>
    %13 = tpu.concatenate %11, %1, %12 in 0 : vector<36x128xf32>, vector<3x128xf32>, vector<1x128xf32> -> vector<40x128xf32>
    %14 = tpu.transpose %13, [1, 0] : vector<40x128xf32> -> vector<128x40xf32>
    %15 = vector.extract_strided_slice %14 {offsets = [0, 0], sizes = [128, 39], strides = [1, 1]} : vector<128x40xf32> to vector<128x39xf32>
    %c0_4 = arith.constant 0 : index
    %c0_5 = arith.constant 0 : index
    %16 = vector.load %arg3[%c0_4, %c0_5] : memref<128x39xf32, #tpu.memory_space<vmem>>, vector<128x39xf32>
    tpu.vector_store %arg3[%c0_4, %c0_5], %15 {strides = array<i32>} : memref<128x39xf32, #tpu.memory_space<vmem>>, vector<128x39xf32>,
    return
  }
  func.func @transform_0(%arg0: i32) -> (i32, i32) {
    %c0_i32 = arith.constant 0 : i32
    %c0_i32_0 = arith.constant 0 : i32
    %c0_i32_1 = arith.constant 0 : i32
    return %c0_i32, %c0_i32_0 : i32, i32
  }
  func.func @transform_1(%arg0: i32) -> (i32, i32) {
    %c0_i32 = arith.constant 0 : i32
    %c0_i32_0 = arith.constant 0 : i32
    return %c0_i32, %arg0 : i32, i32
  }
  func.func @transform_2(%arg0: i32) -> (i32, i32) {
    %c0_i32 = arith.constant 0 : i32
    %c0_i32_0 = arith.constant 0 : i32
    return %arg0, %c0_i32 : i32, i32
  }
}

</mosaic_0001>

<bundles_post_ra>
// kernel: tpu_custom_call.1
= control target key start
LH: loop header
LB: loop body
LE: loop exit
PB: predicated region body
PF: predicated region fallthrough
CT: control target
= control target key end

     0   :  { %v830_v0 = vmov 0   ;;  %v831_v4 = vmov 1966171168   ;;  %v19_v6 = vlaneseq  ;;  %v832_v11 = vmov 1983009808   ;;  %s1348_s0 = inlined_call_operand.vmem [shape: f32[18,2], index: 0, kind: input, shape index: {}]   ;;  %s1349_s1 = inlined_call_operand.vmem [shape: f32[3,128], index: 1, kind: input, shape index: {}]   ;;  %s1350_s2 = inlined_call_operand.vmem [shape: f32[128,39], index: 2, kind: output, shape index: {}]  }
   0x1   :  { %806 = vset.pattern.permute.xlu0 %v830_v0  ;;  %v11_v1 = vld [vmem:[%s1348_s0] sm:$0xff]  ;;  %807 = vset.pattern.permute.xlu1 %v830_v0  ;;  %v13_v2 = vld [vmem:[%s1348_s0 + $0x10] sm:$0x3]  ;;  %v12_v3 = vld [vmem:[%s1348_s0 + $0x8] sm:$0xff]  ;;  %v17_v5 = vunpack.c.l.s4 %v831_v4  ;;  %v53_v12 = vunpack.c.l.s4 %v832_v11  ;;  %vm167_vm0 = vcmask 1041408  }
   0x2   :  { %101 = vperm.xlu0 %806, %v11_v1   ;;  %111 = vperm.xlu1 %807, %v13_v2   ;;  %v20_v8 = vshrl.u32 %v19_v6, 7  ;;  %v829_v10 = vld.sshfl [vmem:[%s1349_s1] sm:$0x13 pattern:$0x75316420] }
   0x3   :  { %v18_v7 = vunpack.c.0.s8 %v17_v5  ;;  %v54_v15 = vunpack.c.0.s8 %v53_v12  ;;  %v23_v16 = vcombine.high %v829_v10, %v829_v10 }
   0x4   :  { %v41_v14 = vsub.s32 0, %v20_v8 }
   0x5   :  { %v21_v9 = vsub.s32 %v18_v7, %v20_v8  ;;  %v57_v18 = vsub.s32 %v54_v15, %v20_v8 }
   0x6   :  { %106 = vperm.xlu0 %806, %v12_v3  }
   0x7   :  { %v30_v13 = vrot.slane %v829_v10, %v21_v9  ;;  %v37_v19 = vrot.slane %v23_v16, %v21_v9 }
   0x9   :  { %v42_v17 = vrot.slane %v30_v13, %v41_v14  ;;  %v38_v20 = vcombine.high %v30_v13, %v30_v13  ;;  %v46_v22 = vrot.slane %v37_v19, %v41_v14 }
   0xb   :  { %v58_v21 = vrot.slane %v42_v17, %v57_v18  ;;  %v51_v23 = vcombine.high %v42_v17, %v42_v17  ;;  %v50_v24 = vrot.slane %v38_v20, %v41_v14  ;;  %v74_v27 = vrot.slane %v46_v22, %v57_v18 }
   0xc   :  { %v67_v28 = vcombine.high %v46_v22, %v46_v22  ;;  %v833_v20 = vmov 683565275   ;;  %v834_v22 = vmov 2475754826  }
   0xd   :  { %v66_v25 = vcombine.high %v58_v21, %v58_v21  ;;  %v65_v26 = vrot.slane %v51_v23, %v57_v18  ;;  %v90_v29 = vrot.slane %v50_v24, %v57_v18  ;;  %v82_v33 = vcombine.high %v74_v27, %v74_v27 }
   0xe   :  { %v81_v32 = vrot.slane %v67_v28, %v57_v18  ;;  %v83_v35 = vcombine.high %v50_v24, %v50_v24  ;;  %v835_v24 = vmov 2131351028  }
   0xf   :  { %v114_v30 = vcombine.low %v58_v21, %v66_v25  ;;  %v115_v31 = vcombine.low %v65_v26, %v74_v27  ;;  %v98_v34 = vcombine.high %v90_v29, %v90_v29 }
  0x10   :  { %v131_v38 = vcombine.low %v82_v33, %v81_v32  ;;  %v97_v40 = vrot.slane %v83_v35, %v57_v18 }
  0x11   :  { %v122_v36 = vrot.slane %v114_v30, %v57_v18  ;;  %v129_v37 = vrot.slane %v115_v31, %v57_v18  ;;  %v132_v39 = vcombine.low %v90_v29, %v98_v34  ;;  %v836_v29 = vmov 2102212464  }
  0x12   :  { %v139_v42 = vrot.slane %v131_v38, %v57_v18  ;;  %v154_v44 = vrot.slane %v97_v40, %v57_v18  ;;  %v837_v38 = vmov 920167782  }
  0x13   :  { %v130_v41 = vcombine.low %v122_v36, %v129_v37  ;;  %v146_v43 = vrot.slane %v132_v39, %v57_v18 }
  0x15   :  { %v147_v48 = vcombine.low %v139_v42, %v146_v43 }
  0x7d   :  { %v102_v45 = vpop.permute.xlu0 %101  ;;  %v112_v46 = vpop.permute.xlu1 %111 }
  0x7e   :  { %v866_v47 = vmul.f32 %v130_v41, %v102_v45  ;;  %v869_v50 = vmul.f32 %v154_v44, %v112_v46 }
  0x80   :  { %v180_v49 = vand.u32 2139095040, %v866_v47  ;;  %v872_v51 = vadd.f32 1.5707964, %v866_v47  ;;  %v177_v53 = vand.u32 2147483647, %v866_v47 }
  0x81   :  { %v107_v52 = vpop.permute.xlu0 %106 }
  0x82   :  { %v181_v54 = vshrl.u32 %v180_v49, 23  ;;  %v168_v55 = vrot.slane %v872_v51, 6  ;;  %v876_v56 = vmul.f32 %v147_v48, %v107_v52  ;;  %v184_v60 = vand.u32 8388607, %v177_v53 }
  0x83   :  { %v838_v49 = vmov 1326507024  }
  0x84   :  { %v756_v57 = vadd.s32 4294967169, %v181_v54  ;;  %v882_v58 = vsel %vm167_vm0, %v869_v50, %v168_v55  ;;  %v284_v59 = vand.u32 2139095040, %v876_v56  ;;  %v281_v63 = vand.u32 2147483647, %v876_v56 }
  0x85   :  { %v385_v61 = vand.u32 2147483647, %v882_v58  ;;  %v388_v62 = vand.u32 2139095040, %v882_v58  ;;  %v185_v5 = vor.u32 8388608, %v184_v60 }
  0x86   :  { %v187_v0 = vadd.s32 1, %v756_v57  ;;  %v285_v1 = vshrl.u32 %v284_v59, 23  ;;  %v894_v9 = vand.u32 8388607, %v281_v63 }
  0x87   :  { %v389_v2 = vshrl.u32 %v388_v62, 23  ;;  %v392_v3 = vand.u32 8388607, %v385_v61  ;;  %v901_v15 = vshll.u32 %v185_v5, 8 }
  0x88   :  { %vm188_vm1 = vcmp.gt.s32.totalorder %v187_v0, 0  ;;  %v760_v4 = vadd.s32 4294967169, %v285_v1  ;;  %v289_v18 = vor.u32 8388608, %v894_v9 }
  0x89   :  { %v189_v6 = vsel %vm188_vm1, %v187_v0, 0  ;;  %v764_v7 = vadd.s32 4294967169, %v389_v2  ;;  %v393_v8 = vor.u32 8388608, %v392_v3 }
  0x8a   :  { %v896_v10 = vand.u32 31, %v189_v6  ;;  %v291_v11 = vadd.s32 1, %v760_v4  ;;  %v898_v13 = vshrl.u32 %v189_v6, 5 }
  0x8b   :  { %v395_v12 = vadd.s32 1, %v764_v7  ;;  %v903_v16 = vshll.u32 %v393_v8, 8 }
  0x8c   :  { %v192_v14 = vsub.s32 32, %v896_v10  ;;  %vm292_vm2 = vcmp.gt.s32.totalorder %v291_v11, 0  ;;  %v194_v21 = vshll.u32 %v833_v20, %v896_v10  ;;  %v197_v23 = vshll.u32 %v834_v22, %v896_v10 }
  0x8d   :  { %vm396_vm3 = vcmp.gt.s32.totalorder %v395_v12, 0  ;;  %v905_v17 = vsel %vm292_vm2, %v291_v11, 0  ;;  %v200_v25 = vshll.u32 %v835_v24, %v896_v10  ;;  %v203_v30 = vshll.u32 %v836_v29, %v896_v10 }
  0x8e   :  { %v397_v19 = vsel %vm396_vm3, %v395_v12, 0  ;;  %v915_v28 = vand.u32 31, %v905_v17  ;;  %v920_v31 = vshrl.u32 %v833_v20, %v192_v14  ;;  %v195_v32 = vshrl.u32 %v834_v22, %v192_v14 }
  0x8f   :  { %v398_v26 = vshrl.u32 %v397_v19, 5  ;;  %v399_v27 = vand.u32 31, %v397_v19  ;;  %v198_v33 = vshrl.u32 %v835_v24, %v192_v14  ;;  %v201_v34 = vshrl.u32 %v836_v29, %v192_v14 }
  0x90   :  { %v204_v39 = vshrl.u32 %v837_v38, %v192_v14  ;;  %v196_v0 = vor.u32 %v195_v32, %v194_v21  ;;  %v207_v21 = vshrl.u32 %v838_v49, %v192_v14  ;;  %vm209_vm8 = vcmp.lt.s32.totalorder %v898_v13, 1 }
  0x91   :  { %v400_v35 = vsub.s32 32, %v399_v27  ;;  %v402_v36 = vshll.u32 %v833_v20, %v399_v27  ;;  %v405_v37 = vshll.u32 %v834_v22, %v399_v27  ;;  %v408_v40 = vshll.u32 %v835_v24, %v399_v27 }
  0x92   :  { %v411_v41 = vshll.u32 %v836_v29, %v399_v27  ;;  %v414_v42 = vshll.u32 %v837_v38, %v399_v27  ;;  %vm417_vm4 = vcmp.lt.s32.totalorder %v398_v26, 1  ;;  %vm418_vm5 = vcmp.lt.s32.totalorder %v398_v26, 2 }
  0x93   :  { %v403_v43 = vshrl.u32 %v834_v22, %v400_v35  ;;  %v406_v44 = vshrl.u32 %v835_v24, %v400_v35  ;;  %v409_v45 = vshrl.u32 %v836_v29, %v400_v35  ;;  %v401_v46 = vshrl.u32 %v833_v20, %v400_v35 }
  0x94   :  { %v412_v48 = vshrl.u32 %v837_v38, %v400_v35  ;;  %v415_v52 = vshrl.u32 %v838_v49, %v400_v35  ;;  %vm419_vm6 = vcmp.lt.s32.totalorder %v398_v26, 3  ;;  %vm420_vm7 = vcmp.lt.s32.totalorder %v398_v26, 4 }
  0x95   :  { %v404_v54 = vor.u32 %v403_v43, %v402_v36  ;;  %v407_v57 = vor.u32 %v406_v44, %v405_v37  ;;  %v410_v59 = vor.u32 %v409_v45, %v408_v40  ;;  %v199_v1 = vor.u32 %v198_v33, %v197_v23 }
  0x96   :  { %v413_v60 = vor.u32 %v412_v48, %v411_v41  ;;  %v416_v62 = vor.u32 %v415_v52, %v414_v42  ;;  %v202_v5 = vor.u32 %v201_v34, %v200_v25  ;;  %v205_v27 = vor.u32 %v204_v39, %v203_v30 }
  0x97   :  { %v422_v2 = vsel %vm420_vm7, %v410_v59, 2102212464  ;;  %v425_v3 = vsel %vm417_vm4, %v404_v54, %v407_v57  ;;  %v429_v4 = vsel %vm417_vm4, %v407_v57, %v410_v59  ;;  %v421_v6 = vsel %vm417_vm4, %v401_v46, %v404_v54 }
  0x98   :  { %v423_v7 = vsel %vm419_vm6, %v407_v57, %v422_v2  ;;  %v426_v8 = vsel %vm420_vm7, %v413_v60, 920167782  ;;  %v430_v11 = vsel %vm420_vm7, %v416_v62, 1326507024  ;;  %v296_v33 = vsub.s32 32, %v915_v28 }
  0x99   :  { %v427_v12 = vsel %vm419_vm6, %v410_v59, %v426_v8  ;;  %v431_v19 = vsel %vm419_vm6, %v413_v60, %v430_v11  ;;  %v206_v25 = vshll.u32 %v837_v38, %v896_v10  ;;  %v424_v14 = vsel %vm418_vm5, %v421_v6, %v423_v7 }
  0x9a   :  { %v428_v23 = vsel %vm418_vm5, %v425_v3, %v427_v12  ;;  %v432_v32 = vsel %vm418_vm5, %v429_v4, %v431_v19  ;;  %vm212_vm9 = vcmp.lt.s32.totalorder %v898_v13, 4  ;;  %vm211_vm10 = vcmp.lt.s32.totalorder %v898_v13, 3 }
  0x9b   :  { %v950_v34 = vmul.u32.u64.low %v903_v16, %v432_v32  ;;  %v951_v35 = vmul.u32.u64.high %v903_v16, %v432_v32, %v950_v34  ;;  %v954_v36 = vmul.u32.u64.low %v903_v16, %v428_v23  ;;  %v955_v37 = vmul.u32.u64.high %v903_v16, %v428_v23, %v954_v36 }
  0x9c   :  { %v208_v30 = vor.u32 %v207_v21, %v206_v25  ;;  %v214_v39 = vsel %vm212_vm9, %v202_v5, 2102212464  ;;  %v217_v10 = vsel %vm209_vm8, %v196_v0, %v199_v1  ;;  %v218_v40 = vsel %vm212_vm9, %v205_v27, 920167782 }
  0x9d   :  { %vm210_vm11 = vcmp.lt.s32.totalorder %v898_v13, 2  ;;  %v219_v41 = vsel %vm211_vm10, %v202_v5, %v218_v40  ;;  %v221_v42 = vsel %vm209_vm8, %v199_v1, %v202_v5  ;;  %vm442_vm12 = vc.u32 %v951_v35, %v954_v36 }
  0x9e   :  { %v222_v43 = vsel %vm212_vm9, %v208_v30, 1326507024  ;;  %v443_v26 = vadd.s32 1, %v955_v37  ;;  %v213_v44 = vsel %vm209_vm8, %v920_v31, %v196_v0  ;;  %v215_v45 = vsel %vm211_vm10, %v199_v1, %v214_v39 }
  0x9f   :  { %v440_v46 = vmul.u32 %v903_v16, %v424_v14  ;;  %v969_v48 = vshrl.u32 %v905_v17, 5  ;;  %v220_v52 = vsel %vm210_vm11, %v217_v10, %v219_v41  ;;  %v223_v54 = vsel %vm211_vm10, %v205_v27, %v222_v43 }
  0xa0   :  { %v444_v57 = vsel %vm442_vm12, %v443_v26, %v955_v37  ;;  %v224_v59 = vsel %vm210_vm11, %v221_v42, %v223_v54  ;;  %v977_v60 = vmul.u32.u64.low %v901_v15, %v220_v52  ;;  %v978_v62 = vmul.u32.u64.high %v901_v15, %v220_v52, %v977_v60 }
  0xa1   :  { %v445_v31 = vadd.s32 %v444_v57, %v440_v46  ;;  %v216_v16 = vsel %vm210_vm11, %v213_v44, %v215_v45  ;;  %v984_v17 = vmul.u32.u64.low %v901_v15, %v224_v59  ;;  %v985_v0 = vmul.u32.u64.high %v901_v15, %v224_v59, %v984_v17 }
  0xa2   :  { %v298_v1 = vshll.u32 %v833_v20, %v915_v28  ;;  %v299_v2 = vshrl.u32 %v834_v22, %v296_v33  ;;  %v301_v3 = vshll.u32 %v834_v22, %v915_v28  ;;  %v302_v4 = vshrl.u32 %v835_v24, %v296_v33 }
  0xa3   :  { %v446_v5 = vadd.s32 536870912, %v445_v31  ;;  %v304_v6 = vshll.u32 %v835_v24, %v915_v28  ;;  %v305_v13 = vshrl.u32 %v836_v29, %v296_v33  ;;  %v308_v7 = vshrl.u32 %v837_v38, %v296_v33 }
  0xa4   :  { %v235_v8 = vadd.s32 1, %v978_v62  ;;  %v300_v11 = vor.u32 %v299_v2, %v298_v1  ;;  %v303_v12 = vor.u32 %v302_v4, %v301_v3  ;;  %v307_v19 = vshll.u32 %v836_v29, %v915_v28 }
  0xa5   :  { %v1000_v27 = vshrl.u32 %v446_v5, 30  ;;  %v232_v21 = vmul.u32 %v901_v15, %v216_v16  ;;  %vm234_vm13 = vc.u32 %v985_v0, %v977_v60  ;;  %v310_v23 = vshll.u32 %v837_v38, %v915_v28 }
  0xa6   :  { %v236_v32 = vsel %vm234_vm13, %v235_v8, %v978_v62  ;;  %v306_v25 = vor.u32 %v305_v13, %v304_v6  ;;  %v309_v34 = vor.u32 %v308_v7, %v307_v19  ;;  %v311_v37 = vshrl.u32 %v838_v49, %v296_v33 }
  0xa7   :  { %v448_v14 = vshll.u32 %v1000_v27, 30  ;;  %v237_v30 = vadd.s32 %v236_v32, %v232_v21  ;;  %v297_v39 = vshrl.u32 %v833_v20, %v296_v33  ;;  %vm313_vm14 = vcmp.lt.s32.totalorder %v969_v48, 1 }
  0xa8   :  { %v312_v15 = vor.u32 %v311_v37, %v310_v23  ;;  %vm314_vm15 = vcmp.lt.s32.totalorder %v969_v48, 2  ;;  %vm316_vm1 = vcmp.lt.s32.totalorder %v969_v48, 4  ;;  %v321_v28 = vsel %vm313_vm14, %v300_v11, %v303_v12 }
  0xa9   :  { %v449_v10 = vsub.s32 %v445_v31, %v448_v14  ;;  %v238_v40 = vadd.s32 536870912, %v237_v30  ;;  %vm315_vm2 = vcmp.lt.s32.totalorder %v969_v48, 3  ;;  %v322_v41 = vsel %vm316_vm1, %v309_v34, 920167782 }
  0xaa   :  { %v318_v42 = vsel %vm316_vm1, %v306_v25, 2102212464  ;;  %v323_v43 = vsel %vm315_vm2, %v306_v25, %v322_v41  ;;  %v325_v33 = vsel %vm313_vm14, %v303_v12, %v306_v25  ;;  %v326_v26 = vsel %vm316_vm1, %v312_v15, 1326507024 }
  0xab   :  { %v451_v44 = vsub.s32 0, %v449_v10  ;;  %v239_v45 = vshrl.u32 %v238_v40, 30  ;;  %v324_v46 = vsel %vm314_vm15, %v321_v28, %v323_v43  ;;  %v317_v52 = vsel %vm313_vm14, %v297_v39, %v300_v11 }
  0xac   :  { %v327_v54 = vsel %vm315_vm2, %v309_v34, %v326_v26  ;;  %v329_v57 = vshll.u32 %v289_v18, 8  ;;  %v1026_v59 = vadd.f32 1.5707964, %v876_v56  ;;  %v319_v16 = vsel %vm315_vm2, %v303_v12, %v318_v42 }
  0xad   :  { %v765_v62 = vmin.u32 %v451_v44, %v449_v10  ;;  %v240_v31 = vshll.u32 %v239_v45, 30  ;;  %v328_v17 = vsel %vm314_vm15, %v325_v33, %v327_v54  ;;  %v320_v13 = vsel %vm314_vm15, %v317_v52, %v319_v16 }
  0xae   :  { %v1030_v1 = vmul.u32.u64.low %v329_v57, %v328_v17  ;;  %v1031_v2 = vmul.u32.u64.high %v329_v57, %v328_v17, %v1030_v1  ;;  %v1033_v3 = vmul.u32.u64.low %v329_v57, %v324_v46  ;;  %v1034_v4 = vmul.u32.u64.high %v329_v57, %v324_v46, %v1033_v3 }
  0xaf   :  { %v453_v5 = vclz %v765_v62  ;;  %v241_v6 = vsub.s32 %v237_v30, %v240_v31  ;;  %v169_v8 = vrot.slane %v1026_v59, 6  ;;  %v163_v12 = vadd.f32 1.5707964, %v869_v50 }
  0xb0   :  { %vm338_vm3 = vc.u32 %v1031_v2, %v1033_v3  ;;  %v339_v7 = vadd.s32 1, %v1034_v4  ;;  %v336_v21 = vmul.u32 %v329_v57, %v320_v13  ;;  %v441_v32 = vadd.s32 %v954_v36, %v951_v35 }
  0xb1   :  { %v766_v9 = vadd.s32 4294967294, %v453_v5  ;;  %v243_v18 = vsub.s32 0, %v241_v6  ;;  %v263_v37 = vsub.s32 4, %v239_v45  ;;  %v1050_v30 = vsel %vm167_vm0, %v168_v55, %v169_v8 }
  0xb2   :  { %v340_v23 = vsel %vm338_vm3, %v339_v7, %v1034_v4  ;;  %v171_v40 = vrot.slane %v163_v12, 6  ;;  %vm179_vm5 = vcmp.lt.s32.totalorder %v866_v47, 0  ;;  %v492_v36 = vand.u32 2139095040, %v1050_v30 }
  0xb3   :  { %vm767_vm4 = vcmp.lt.s32.totalorder %v766_v9, 0  ;;  %v757_v11 = vmin.u32 %v243_v18, %v241_v6  ;;  %v341_v14 = vadd.s32 %v340_v23, %v336_v21  ;;  %vm1056_vm7 = vcmp.le.f32.partialorder %v177_v53, 0.7853982 }
  0xb4   :  { %v456_v19 = vsel %vm767_vm4, 0, %v766_v9  ;;  %v233_v26 = vadd.s32 %v977_v60, %v985_v0  ;;  %v471_v46 = vsub.s32 4, %v1000_v27  ;;  %vm387_vm8 = vcmp.lt.s32.totalorder %v882_v58, 0 }
  0xb5   :  { %v457_v48 = vsub.s32 32, %v456_v19  ;;  %v461_v25 = vsub.s32 4294967266, %v456_v19  ;;  %v245_v34 = vclz %v757_v11  ;;  %v458_v39 = vshll.u32 %v449_v10, %v456_v19 }
  0xb6   :  { %v342_v41 = vadd.s32 536870912, %v341_v14  ;;  %v264_v10 = vsel %vm179_vm5, %v263_v37, %v239_v45  ;;  %v493_v53 = vshrl.u32 %v492_v36, 23  ;;  %vm283_vm9 = vcmp.lt.s32.totalorder %v876_v56, 0 }
  0xb7   :  { %v459_v15 = vshrl.u32 %v441_v32, %v457_v48  ;;  %v462_v50 = vadd.s32 127, %v461_v25  ;;  %v758_v28 = vadd.s32 4294967294, %v245_v34  ;;  %v266_v31 = vsel %vm1056_vm7, 0, %v264_v10 }
  0xb8   :  { %v343_v43 = vshrl.u32 %v342_v41, 30  ;;  %v768_v1 = vadd.s32 4294967169, %v493_v53  ;;  %v472_v0 = vsel %vm387_vm8, %v471_v46, %v1000_v27  ;;  %v489_v4 = vand.u32 2147483647, %v1050_v30 }
  0xb9   :  { %v460_v42 = vor.u32 %v459_v15, %v458_v39  ;;  %v463_v35 = vshll.u32 %v462_v50, 23  ;;  %vm759_vm6 = vcmp.lt.s32.totalorder %v758_v28, 0  ;;  %vm1078_vm10 = vcmp.le.f32.partialorder %v385_v61, 0.7853982 }
  0xba   :  { %v248_v55 = vsel %vm759_vm6, 0, %v758_v28  ;;  %v344_v54 = vshll.u32 %v343_v43, 30  ;;  %v499_v13 = vadd.s32 1, %v768_v1  ;;  %v270_v11 = vadd.s32 3, %v266_v31 }
  0xbb   :  { %v464_v33 = vor.u32 4788187, %v463_v35  ;;  %v249_v44 = vsub.s32 32, %v248_v55  ;;  %v253_v52 = vsub.s32 4294967266, %v248_v55  ;;  %v467_v59 = vcvt.s32.f32 %v460_v42 }
  0xbc   :  { %v250_v45 = vshll.u32 %v241_v6, %v248_v55  ;;  %v1068_v17 = vsub.s32 %v341_v14, %v344_v54  ;;  %v1083_v12 = vsel %vm167_vm0, %v169_v8, %v171_v40  ;;  %v474_v21 = vsel %vm1078_vm10, 0, %v472_v0 }
  0xbd   :  { %v465_v57 = vand.u32 2147483647, %v464_v33  ;;  %v251_v62 = vshrl.u32 %v233_v26, %v249_v44  ;;  %v254_v16 = vadd.s32 127, %v253_v52  ;;  %vm500_vm11 = vcmp.gt.s32.totalorder %v499_v13, 0 }
  0xbe   :  { %v347_v18 = vsub.s32 0, %v1068_v17  ;;  %v367_v32 = vsub.s32 4, %v343_v43  ;;  %v1092_v61 = vand.u32 8388607, %v489_v4  ;;  %v501_v48 = vsel %vm500_vm11, %v499_v13, 0 }
  0xbf   :  { %v468_v60 = vmul.f32 %v467_v59, %v465_v57  ;;  %v252_v5 = vor.u32 %v251_v62, %v250_v45  ;;  %v255_v9 = vshll.u32 %v254_v16, 23  ;;  %v1097_v14 = vand.u32 3, %v270_v11 }
  0xc0   :  { %v761_v27 = vmin.u32 %v347_v18, %v1068_v17  ;;  %v337_v39 = vadd.s32 %v1033_v3, %v1031_v2  ;;  %v1101_v15 = vadd.s32 3, %v474_v21  ;;  %v1103_v50 = vshrl.u32 %v501_v48, 5 }
  0xc1   :  { %v469_v7 = vxor.u32 2147483648, %v468_v60  ;;  %v256_v19 = vor.u32 4788187, %v255_v9  ;;  %v259_v34 = vcvt.s32.f32 %v252_v5  ;;  %v503_v41 = vand.u32 31, %v501_v48 }
  0xc2   :  { %v349_v37 = vclz %v761_v27  ;;  %v1107_v42 = vsel %vm283_vm9, %v367_v32, %v343_v43  ;;  %v497_v35 = vor.u32 8388608, %v1092_v61  ;;  %v596_v36 = vand.u32 2139095040, %v1083_v12 }
  0xc3   :  { %v470_v23 = vsel %vm387_vm8, %v469_v7, %v468_v60  ;;  %v257_v25 = vand.u32 2147483647, %v256_v19  ;;  %v504_v2 = vsub.s32 32, %v503_v41  ;;  %vm521_vm12 = vcmp.lt.s32.totalorder %v1103_v50, 1 }
  0xc4   :  { %v473_v8 = vsel %vm1078_vm10, %v882_v58, %v470_v23  ;;  %v762_v40 = vadd.s32 4294967294, %v349_v37  ;;  %v506_v10 = vshll.u32 %v833_v20, %v503_v41  ;;  %v509_v33 = vshll.u32 %v834_v22, %v503_v41 }
  0xc5   :  { %808 = vcosq.f32 %v473_v8  ;;  %v260_v28 = vmul.f32 %v259_v34, %v257_v25  ;;  %v512_v26 = vshll.u32 %v835_v24, %v503_v41  ;;  %v515_v52 = vshll.u32 %v836_v29, %v503_v41 }
  0xc6   :  { %810 = vsinq.f32 %v473_v8  ;;  %vm763_vm0 = vcmp.lt.s32.totalorder %v762_v40, 0  ;;  %v507_v57 = vshrl.u32 %v834_v22, %v504_v2  ;;  %v510_v59 = vshrl.u32 %v835_v24, %v504_v2 }
  0xc7   :  { %v261_v55 = vxor.u32 2147483648, %v260_v28  ;;  %v352_v3 = vsel %vm763_vm0, 0, %v762_v40  ;;  %v513_v45 = vshrl.u32 %v836_v29, %v504_v2  ;;  %v516_v60 = vshrl.u32 %v837_v38, %v504_v2 }
  0xc8   :  { %v353_v44 = vsub.s32 32, %v352_v3  ;;  %v357_v46 = vsub.s32 4294967266, %v352_v3  ;;  %v354_v53 = vshll.u32 %v1068_v17, %v352_v3  ;;  %v508_v16 = vor.u32 %v507_v57, %v506_v10 }
  0xc9   :  { %v262_v43 = vsel %vm179_vm5, %v261_v55, %v260_v28  ;;  %v511_v1 = vor.u32 %v510_v59, %v509_v33  ;;  %v514_v51 = vor.u32 %v513_v45, %v512_v26  ;;  %vm522_vm13 = vcmp.lt.s32.totalorder %v1103_v50, 2 }
  0xca   :  { %v265_v54 = vsel %vm1056_vm7, %v866_v47, %v262_v43  ;;  %v355_v62 = vshrl.u32 %v337_v39, %v353_v44  ;;  %v358_v31 = vadd.s32 127, %v357_v46  ;;  %v517_v17 = vor.u32 %v516_v60, %v515_v52 }
  0xcb   :  { %812 = vcosq.f32 %v265_v54  ;;  %v518_v9 = vshll.u32 %v837_v38, %v503_v41  ;;  %v519_v18 = vshrl.u32 %v838_v49, %v504_v2  ;;  %vm523_vm14 = vcmp.lt.s32.totalorder %v1103_v50, 3 }
  0xcc   :  { %814 = vsinq.f32 %v265_v54  ;;  %v356_v0 = vor.u32 %v355_v62, %v354_v53  ;;  %v359_v5 = vshll.u32 %v358_v31, 23  ;;  %v505_v6 = vshrl.u32 %v833_v20, %v504_v2 }
  0xcd   :  { %vm524_vm15 = vcmp.lt.s32.totalorder %v1103_v50, 4  ;;  %v529_v7 = vsel %vm521_vm12, %v508_v16, %v511_v1  ;;  %v520_v11 = vor.u32 %v519_v18, %v518_v9  ;;  %v597_v21 = vshrl.u32 %v596_v36, 23 }
  0xce   :  { %v360_v13 = vor.u32 4788187, %v359_v5  ;;  %v526_v19 = vsel %vm524_vm15, %v514_v51, 2102212464  ;;  %v530_v27 = vsel %vm524_vm15, %v517_v17, 920167782  ;;  %v363_v32 = vcvt.s32.f32 %v356_v0 }
  0xcf   :  { %v531_v61 = vsel %vm523_vm14, %v514_v51, %v530_v27  ;;  %v533_v48 = vsel %vm521_vm12, %v511_v1, %v514_v51  ;;  %v525_v25 = vsel %vm521_vm12, %v505_v6, %v508_v16  ;;  %v534_v37 = vsel %vm524_vm15, %v520_v11, 1326507024 }
  0xd0   :  { %v361_v23 = vand.u32 2147483647, %v360_v13  ;;  %v532_v34 = vsel %vm522_vm13, %v529_v7, %v531_v61  ;;  %v537_v39 = vshll.u32 %v497_v35, 8  ;;  %v527_v41 = vsel %vm523_vm14, %v511_v1, %v526_v19 }
  0xd1   :  { %v535_v36 = vsel %vm523_vm14, %v517_v17, %v534_v37  ;;  %v772_v55 = vadd.s32 4294967169, %v597_v21  ;;  %vm1152_vm1 = vcmp.le.f32.partialorder %v281_v63, 0.7853982  ;;  %vm269_vm2 = vweird.f32 %v866_v47 }
  0xd2   :  { %v1138_v8 = vpop.eup %808  ;;  %v364_v40 = vmul.f32 %v363_v32, %v361_v23  ;;  %v536_v3 = vsel %vm522_vm13, %v533_v48, %v535_v36  ;;  %v1158_v35 = vmul.u32.u64.low %v537_v39, %v532_v34  ;;  %v1159_v10 = vmul.u32.u64.high %v537_v39, %v532_v34, %v1158_v35 }
  0xd3   :  { %v1144_v28 = vpop.eup %810  ;;  %v370_v26 = vsel %vm1152_vm1, 0, %v1107_v42  ;;  %v1165_v43 = vmul.u32.u64.low %v537_v39, %v536_v3  ;;  %v1166_v44 = vmul.u32.u64.high %v537_v39, %v536_v3, %v1165_v43  ;;  %v1170_v63 = vand.u32 3, %v1101_v15 }
  0xd4   :  { %v365_v33 = vxor.u32 2147483648, %v364_v40  ;;  %v528_v46 = vsel %vm522_vm13, %v525_v25, %v527_v41  ;;  %v603_v52 = vadd.s32 1, %v772_v55  ;;  %vm272_vm3 = vcmp.lt.s32.totalorder %v1097_v14, 2 }
  0xd5   :  { %vm276_vm4 = vcmp.eq.s32.totalorder %v1097_v14, 2  ;;  %v593_v42 = vand.u32 2147483647, %v1083_v12  ;;  %v374_v15 = vadd.s32 3, %v370_v26  ;;  %v547_v59 = vadd.s32 1, %v1159_v10 }
  0xd6   :  { %v366_v54 = vsel %vm283_vm9, %v365_v33, %v364_v40  ;;  %vm604_vm5 = vcmp.gt.s32.totalorder %v603_v52, 0  ;;  %v544_v31 = vmul.u32 %v537_v39, %v528_v46  ;;  %vm546_vm6 = vc.u32 %v1166_v44, %v1158_v35 }
  0xd7   :  { %v369_v57 = vsel %vm1152_vm1, %v876_v56, %v366_v54  ;;  %v548_v16 = vsel %vm546_vm6, %v547_v59, %v1159_v10  ;;  %v605_v1 = vsel %vm604_vm5, %v603_v52, 0  ;;  %vm273_vm7 = vcmp.eq.s32.totalorder %v1097_v14, 0 }
  0xd8   :  { %v813_v53 = vpop.eup %812  ;;  %816 = vcosq.f32 %v369_v57  ;;  %v549_v0 = vadd.s32 %v548_v16, %v544_v31  ;;  %v607_v5 = vand.u32 31, %v605_v1  ;;  %v1189_v17 = vand.u32 3, %v374_v15 }
  0xd9   :  { %v815_v50 = vpop.eup %814  ;;  %v277_v62 = vxor.u32 2147483648, %v813_v53  ;;  %818 = vsinq.f32 %v369_v57  ;;  %v485_v9 = vxor.u32 2147483648, %v1138_v8  ;;  %v600_v18 = vand.u32 8388607, %v593_v42 }
  0xda   :  { %v274_v45 = vxor.u32 2147483648, %v815_v50  ;;  %v550_v6 = vadd.s32 536870912, %v549_v0  ;;  %v1196_v7 = vshrl.u32 %v605_v1, 5  ;;  %v608_v11 = vsub.s32 32, %v607_v5 }
  0xdb   :  { %v278_v60 = vsel %vm276_vm4, %v277_v62, %v815_v50  ;;  %v610_v27 = vshll.u32 %v833_v20, %v607_v5  ;;  %v613_v21 = vshll.u32 %v834_v22, %v607_v5  ;;  %v616_v23 = vshll.u32 %v835_v24, %v607_v5 }
  0xdc   :  { %v275_v51 = vsel %vm273_vm7, %v813_v53, %v274_v45  ;;  %v1203_v32 = vshrl.u32 %v550_v6, 30  ;;  %v611_v61 = vshrl.u32 %v834_v22, %v608_v11  ;;  %v614_v14 = vshrl.u32 %v835_v24, %v608_v11 }
  0xdd   :  { %v279_v13 = vsel %vm272_vm3, %v275_v51, %v278_v60  ;;  %v619_v48 = vshll.u32 %v836_v29, %v607_v5  ;;  %v617_v25 = vshrl.u32 %v836_v29, %v608_v11  ;;  %v620_v47 = vshrl.u32 %v837_v38, %v608_v11 }
  0xde   :  { %v280_v19 = vsel %vm269_vm2, nan, %v279_v13  ;;  %v622_v34 = vshll.u32 %v837_v38, %v607_v5  ;;  %v623_v37 = vshrl.u32 %v838_v49, %v608_v11  ;;  %vm481_vm8 = vcmp.eq.s32.totalorder %v1170_v63, 0 }
  0xdf   :  { %703 = vxpose.xlu1.b32.start [1/5] (short) %v280_v19, 128  ;;  %v482_v39 = vxor.u32 2147483648, %v1144_v28  ;;  %v552_v40 = vshll.u32 %v1203_v32, 30  ;;  %v612_v41 = vor.u32 %v611_v61, %v610_v27  ;;  %v615_v22 = vor.u32 %v614_v14, %v613_v21 }
  0xe0   :  { %v618_v36 = vor.u32 %v617_v25, %v616_v23  ;;  %v621_v24 = vor.u32 %v620_v47, %v619_v48  ;;  %v624_v55 = vor.u32 %v623_v37, %v622_v34  ;;  %vm373_vm9 = vweird.f32 %v876_v56 }
  0xe1   :  { %vm376_vm10 = vcmp.lt.s32.totalorder %v1189_v17, 2  ;;  %vm377_vm11 = vcmp.eq.s32.totalorder %v1189_v17, 0  ;;  %vm484_vm0 = vcmp.eq.s32.totalorder %v1170_v63, 2  ;;  %v553_v29 = vsub.s32 %v549_v0, %v552_v40 }
  0xe2   :  { %vm380_vm12 = vcmp.eq.s32.totalorder %v1189_v17, 2  ;;  %v486_v38 = vsel %vm484_vm0, %v485_v9, %v1144_v28  ;;  %v601_v49 = vor.u32 8388608, %v600_v18  ;;  %vm628_vm13 = vcmp.lt.s32.totalorder %v1196_v7, 4 }
  0xe3   :  { %v555_v2 = vsub.s32 0, %v553_v29  ;;  %vm625_vm14 = vcmp.lt.s32.totalorder %v1196_v7, 1  ;;  %vm627_vm15 = vcmp.lt.s32.totalorder %v1196_v7, 3  ;;  %v634_v3 = vsel %vm628_vm13, %v621_v24, 920167782 }
  0xe4   :  { %v483_v33 = vsel %vm481_vm8, %v1138_v8, %v482_v39  ;;  %v633_v26 = vsel %vm625_vm14, %v612_v41, %v615_v22  ;;  %v635_v28 = vsel %vm627_vm15, %v618_v36, %v634_v3  ;;  %v638_v43 = vsel %vm628_vm13, %v624_v55, 1326507024 }
  0xe5   :  { %v817_v10 = vpop.eup %816  ;;  %v769_v54 = vmin.u32 %v555_v2, %v553_v29  ;;  %v630_v53 = vsel %vm628_vm13, %v618_v36, 2102212464  ;;  %v637_v57 = vsel %vm625_vm14, %v615_v22, %v618_v36  ;;  %v609_v59 = vshrl.u32 %v833_v20, %v608_v11 }
  0xe6   :  { %v819_v46 = vpop.eup %818  ;;  %v381_v52 = vxor.u32 2147483648, %v817_v10  ;;  %vm626_vm1 = vcmp.lt.s32.totalorder %v1196_v7, 2  ;;  %v639_v8 = vsel %vm627_vm15, %v621_v24, %v638_v43  ;;  %v641_v45 = vshll.u32 %v601_v49, 8 }
  0xe7   :  { %v378_v15 = vxor.u32 2147483648, %v819_v46  ;;  %v557_v62 = vclz %v769_v54  ;;  %v636_v31 = vsel %vm626_vm1, %v633_v26, %v635_v28  ;;  %v629_v1 = vsel %vm625_vm14, %v609_v59, %v612_v41 }
  0xe8   :  { %v382_v50 = vsel %vm380_vm12, %v381_v52, %v819_v46  ;;  %v631_v20 = vsel %vm627_vm15, %v615_v22, %v630_v53  ;;  %v640_v60 = vsel %vm626_vm1, %v637_v57, %v639_v8  ;;  %vm480_vm2 = vcmp.lt.s32.totalorder %v1170_v63, 2 }
  0xe9   :  { %v379_v16 = vsel %vm377_vm11, %v817_v10, %v378_v15  ;;  %v770_v5 = vadd.s32 4294967294, %v557_v62  ;;  %v1251_v51 = vmul.u32.u64.low %v641_v45, %v640_v60  ;;  %v1252_v9 = vmul.u32.u64.high %v641_v45, %v640_v60, %v1251_v51 }
  0xea   :  { %v383_v0 = vsel %vm376_vm10, %v379_v16, %v382_v50  ;;  %v1257_v13 = vmul.u32.u64.low %v641_v45, %v636_v31  ;;  %v1258_v6 = vmul.u32.u64.high %v641_v45, %v636_v31, %v1257_v13  ;;  %v487_v11 = vsel %vm480_vm2, %v483_v33, %v486_v38 }
  0xeb   :  { %v384_v18 = vsel %vm373_vm9, nan, %v383_v0  ;;  %vm771_vm3 = vcmp.lt.s32.totalorder %v770_v5, 0  ;;  %v632_v17 = vsel %vm626_vm1, %v629_v1, %v631_v20  ;;  %vm477_vm4 = vweird.f32 %v882_v58 }
  0xec   :  { %704 = vxpose.xlu1.b32.cont [2/5] (short) %v384_v18, 128  ;;  %v560_v19 = vsel %vm771_vm3, 0, %v770_v5  ;;  %v545_v27 = vadd.s32 %v1158_v35, %v1166_v44  ;;  %v488_v23 = vsel %vm477_vm4, nan, %v487_v11  ;;  %vm650_vm5 = vc.u32 %v1252_v9, %v1257_v13 }
  0xed   :  { %v561_v21 = vsub.s32 32, %v560_v19  ;;  %v565_v56 = vsub.s32 4294967266, %v560_v19  ;;  %v651_v63 = vadd.s32 1, %v1258_v6  ;;  %v562_v61 = vshll.u32 %v553_v29, %v560_v19 }
  0xee   :  { %v648_v25 = vmul.u32 %v641_v45, %v632_v17  ;;  %vm491_vm6 = vcmp.lt.s32.totalorder %v1050_v30, 0  ;;  %v575_v55 = vsub.s32 4, %v1203_v32  ;;  %vm490_vm7 = vcmp.le.f32.partialorder %v489_v4, 0.7853982 }
  0xef   :  { %v563_v14 = vshrl.u32 %v545_v27, %v561_v21  ;;  %v566_v48 = vadd.s32 127, %v565_v56  ;;  %v652_v7 = vsel %vm650_vm5, %v651_v63, %v1258_v6  ;;  %v649_v46 = vadd.s32 %v1257_v13, %v1252_v9 }
  0xf0   :  { %705 = vxpose.xlu1.b32.cont [3/5] (short) %v488_v23, 128  ;;  %v653_v58 = vadd.s32 %v652_v7, %v648_v25  ;;  %v576_v3 = vsel %vm491_vm6, %v575_v55, %v1203_v32  ;;  %vm581_vm0 = vweird.f32 %v1050_v30  ;;  %vm595_vm12 = vcmp.lt.s32.totalorder %v1083_v12, 0 }
  0xf1   :  { %v564_v47 = vor.u32 %v563_v14, %v562_v61  ;;  %v567_v34 = vshll.u32 %v566_v48, 23  ;;  %v578_v33 = vsel %vm490_vm7, 0, %v576_v3  ;;  %vm594_vm13 = vcmp.le.f32.partialorder %v593_v42, 0.7853982  ;;  %v828_v42 = vld [vmem:[%s1349_s1] sm:$0x7] }
  0xf2   :  { %v654_v39 = vadd.s32 536870912, %v653_v58  ;;  %v582_v28 = vadd.s32 3, %v578_v33  ;;  %v697_v61 = vrot.slane %v828_v42, 4  ;;  %vm699_vm2 = vcmask 1043456  }
  0xf3   :  { %v568_v37 = vor.u32 4788187, %v567_v34  ;;  %v571_v44 = vcvt.s32.f32 %v564_v47  ;;  %vm685_vm3 = vweird.f32 %v1083_v12  ;;  %vm701_vm4 = vcmask 1046528  }
  0xf4   :  { %v655_v40 = vshrl.u32 %v654_v39, 30  ;;  %v583_v15 = vand.u32 3, %v582_v28  ;;  %vm735_vm5 = vcmask 318464  }
  0xf5   :  { %v569_v35 = vand.u32 2147483647, %v568_v37 }
  0xf6   :  { %v656_v22 = vshll.u32 %v655_v40, 30  ;;  %vm588_vm9 = vcmp.eq.s32.totalorder %v583_v15, 2  ;;  %vm585_vm10 = vcmp.eq.s32.totalorder %v583_v15, 0  ;;  %vm584_vm11 = vcmp.lt.s32.totalorder %v583_v15, 2 }
  0xf7   :  { %v572_v41 = vmul.f32 %v571_v44, %v569_v35  ;;  %v679_v18 = vsub.s32 4, %v655_v40 }
  0xf8   :  { %v657_v24 = vsub.s32 %v653_v58, %v656_v22 }
  0xf9   :  { %v573_v36 = vxor.u32 2147483648, %v572_v41  ;;  %v680_v11 = vsel %vm595_vm12, %v679_v18, %v655_v40 }
  0xfa   :  { %v659_v38 = vsub.s32 0, %v657_v24  ;;  %v682_v19 = vsel %vm594_vm13, 0, %v680_v11 }
  0xfb   :  { %v574_v29 = vsel %vm491_vm6, %v573_v36, %v572_v41  ;;  %v686_v17 = vadd.s32 3, %v682_v19 }
  0xfc   :  { %v577_v49 = vsel %vm490_vm7, %v1050_v30, %v574_v29  ;;  %v773_v2 = vmin.u32 %v659_v38, %v657_v24 }
  0xfd   :  { %820 = vcosq.f32 %v577_v49  ;;  %v687_v30 = vand.u32 3, %v686_v17 }
  0xfe   :  { %822 = vsinq.f32 %v577_v49  ;;  %v661_v10 = vclz %v773_v2 }
  0xff   :  { %vm692_vm14 = vcmp.eq.s32.totalorder %v687_v30, 2  ;;  %vm689_vm15 = vcmp.eq.s32.totalorder %v687_v30, 0  ;;  %vm688_vm1 = vcmp.lt.s32.totalorder %v687_v30, 2 }
 0x100   :  { %v774_v26 = vadd.s32 4294967294, %v661_v10 }
 0x102   :  { %vm775_vm8 = vcmp.lt.s32.totalorder %v774_v26, 0 }
 0x103   :  { %v664_v43 = vsel %vm775_vm8, 0, %v774_v26 }
 0x104   :  { %v665_v52 = vsub.s32 32, %v664_v43  ;;  %v669_v54 = vsub.s32 4294967266, %v664_v43  ;;  %v666_v4 = vshll.u32 %v657_v24, %v664_v43 }
 0x106   :  { %v667_v53 = vshrl.u32 %v649_v46, %v665_v52  ;;  %v670_v57 = vadd.s32 127, %v669_v54 }
 0x108   :  { %v668_v59 = vor.u32 %v667_v53, %v666_v4  ;;  %v671_v8 = vshll.u32 %v670_v57, 23 }
 0x10a   :  { %v821_v50 = vpop.eup %820  ;;  %v672_v31 = vor.u32 4788187, %v671_v8  ;;  %v675_v20 = vcvt.s32.f32 %v668_v59 }
 0x10b   :  { %v823_v62 = vpop.eup %822  ;;  %v589_v32 = vxor.u32 2147483648, %v821_v50 }
 0x10c   :  { %v586_v45 = vxor.u32 2147483648, %v823_v62  ;;  %v673_v1 = vand.u32 2147483647, %v672_v31 }
 0x10d   :  { %v590_v16 = vsel %vm588_vm9, %v589_v32, %v823_v62 }
 0x10e   :  { %v587_v60 = vsel %vm585_vm10, %v821_v50, %v586_v45  ;;  %v676_v5 = vmul.f32 %v675_v20, %v673_v1 }
 0x10f   :  { %v591_v0 = vsel %vm584_vm11, %v587_v60, %v590_v16 }
 0x110   :  { %v592_v51 = vsel %vm581_vm0, nan, %v591_v0  ;;  %v677_v9 = vxor.u32 2147483648, %v676_v5 }
 0x111   :  { %706 = vxpose.xlu1.b32.cont [4/5] (short) %v592_v51, 128 }
 0x112   :  { %v678_v13 = vsel %vm595_vm12, %v677_v9, %v676_v5 }
 0x113   :  { %v681_v6 = vsel %vm594_vm13, %v1083_v12, %v678_v13 }
 0x114   :  { %824 = vcosq.f32 %v681_v6 }
 0x115   :  { %826 = vsinq.f32 %v681_v6 }
 0x121   :  { %v825_v27 = vpop.eup %824 }
 0x122   :  { %v827_v21 = vpop.eup %826  ;;  %v693_v56 = vxor.u32 2147483648, %v825_v27 }
 0x123   :  { %v690_v23 = vxor.u32 2147483648, %v827_v21 }
 0x124   :  { %v694_v63 = vsel %vm692_vm14, %v693_v56, %v827_v21 }
 0x125   :  { %v691_v14 = vsel %vm689_vm15, %v825_v27, %v690_v23 }
 0x126   :  { %v695_v48 = vsel %vm688_vm1, %v691_v14, %v694_v63 }
 0x127   :  { %v696_v25 = vsel %vm685_vm3, nan, %v695_v48 }
 0x128   :  { %v700_v7 = vsel %vm699_vm2, %v696_v25, %v697_v61 }
 0x129   :  { %v702_v47 = vsel %vm701_vm4, %v700_v7, 0.0 }
 0x12a   :  { %707 = vxpose.xlu1.b32.end [5/5] (short) %v702_v47, 128 }
 0x196   :  { %v719_v34 = vpop.trf.xlu1 }
 0x197   :  { %736 = vst.msk [vmem:[%s1350_s2] sm:$0xff] %vm735_vm5, %v719_v34 }
 0x19a   :  { %v720_v58 = vpop.trf.xlu1 }
 0x19b   :  { %737 = vst.msk [vmem:[%s1350_s2 + $0x8] sm:$0xff] %vm735_vm5, %v720_v58 }
 0x19e   :  { %v721_v12 = vpop.trf.xlu1 }
 0x19f   :  { %738 = vst.msk [vmem:[%s1350_s2 + $0x10] sm:$0xff] %vm735_vm5, %v721_v12 }
 0x1a2   :  { %v722_v37 = vpop.trf.xlu1 }
 0x1a3   :  { %739 = vst.msk [vmem:[%s1350_s2 + $0x18] sm:$0xff] %vm735_vm5, %v722_v37 }
 0x1a6   :  { %v723_v39 = vpop.trf.xlu1 }
 0x1a7   :  { %740 = vst.msk [vmem:[%s1350_s2 + $0x20] sm:$0xff] %vm735_vm5, %v723_v39 }
 0x1aa   :  { %v724_v35 = vpop.trf.xlu1 }
 0x1ab   :  { %741 = vst.msk [vmem:[%s1350_s2 + $0x28] sm:$0xff] %vm735_vm5, %v724_v35 }
 0x1ae   :  { %v725_v44 = vpop.trf.xlu1 }
 0x1af   :  { %742 = vst.msk [vmem:[%s1350_s2 + $0x30] sm:$0xff] %vm735_vm5, %v725_v44 }
 0x1b2   :  { %v726_v40 = vpop.trf.xlu1 }
 0x1b3   :  { %743 = vst.msk [vmem:[%s1350_s2 + $0x38] sm:$0xff] %vm735_vm5, %v726_v40 }
 0x1b6   :  { %v727_v41 = vpop.trf.xlu1 }
 0x1b7   :  { %744 = vst.msk [vmem:[%s1350_s2 + $0x40] sm:$0xff] %vm735_vm5, %v727_v41 }
 0x1ba   :  { %v728_v22 = vpop.trf.xlu1 }
 0x1bb   :  { %745 = vst.msk [vmem:[%s1350_s2 + $0x48] sm:$0xff] %vm735_vm5, %v728_v22 }
 0x1be   :  { %v729_v36 = vpop.trf.xlu1 }
 0x1bf   :  { %746 = vst.msk [vmem:[%s1350_s2 + $0x50] sm:$0xff] %vm735_vm5, %v729_v36 }
 0x1c2   :  { %v730_v24 = vpop.trf.xlu1 }
 0x1c3   :  { %747 = vst.msk [vmem:[%s1350_s2 + $0x58] sm:$0xff] %vm735_vm5, %v730_v24 }
 0x1c6   :  { %v731_v55 = vpop.trf.xlu1 }
 0x1c7   :  { %748 = vst.msk [vmem:[%s1350_s2 + $0x60] sm:$0xff] %vm735_vm5, %v731_v55 }
 0x1ca   :  { %v732_v29 = vpop.trf.xlu1 }
 0x1cb   :  { %749 = vst.msk [vmem:[%s1350_s2 + $0x68] sm:$0xff] %vm735_vm5, %v732_v29 }
 0x1ce   :  { %v733_v38 = vpop.trf.xlu1 }
 0x1cf   :  { %750 = vst.msk [vmem:[%s1350_s2 + $0x70] sm:$0xff] %vm735_vm5, %v733_v38 }
 0x1d2   :  { %v734_v49 = vpop.trf.xlu1 }
 0x1d3   :  { %751 = vst.msk [vmem:[%s1350_s2 + $0x78] sm:$0xff] %vm735_vm5, %v734_v49 }

</bundles_post_ra>
